<compile_context>
chip_gen: v5e
topology: v5e:2x2
jax: 0.10.0
libtpu: 0.0.40
codegen_flags: <defaults>
</compile_context>

<pallas_src>
import math
import functools

import jax
import jax.numpy as jnp
from jax import lax
from jax.experimental import pallas as pl
from jax.experimental.pallas import tpu as pltpu

PI = 0.5
SIGMA1 = math.exp(-0.0)      # prior_sigma1 = exp(-0) = 1.0
SIGMA2 = math.exp(1.0)       # prior_sigma2 = exp(1)
LOG_SQRT_2PI = 0.5 * math.log(2.0 * math.pi)

# Factored scale-mixture constants:
#   log(PI*N(v;0,s1) + (1-PI)*N(v;0,s2)) = -A*v^2 + log(C1*exp(-D*v^2) + C2)
# with D >= 0 (exp argument <= 0, no overflow) and C2 > 0 (log argument never 0).
_A = 1.0 / (2.0 * SIGMA2 ** 2)
_D = 1.0 / (2.0 * SIGMA1 ** 2) - 1.0 / (2.0 * SIGMA2 ** 2)
_C1 = PI / (math.sqrt(2.0 * math.pi) * SIGMA1)
_C2 = (1.0 - PI) / (math.sqrt(2.0 * math.pi) * SIGMA2)


def _softplus(x):
    # overflow-safe softplus (log1p(exp(x)) overflows f32 for x > ~88)
    return jnp.maximum(x, 0.0) + jnp.log1p(jnp.exp(-jnp.abs(x)))


def _mixture_logpdf(v):
    v2 = v * v
    return -_A * v2 + jnp.log(_C1 * jnp.exp(-_D * v2) + _C2)


def _round_up(v, m):
    return ((v + m - 1) // m) * m


def _divisor_tiles(dim_p, cap, unit=128):
    """Multiples of `unit` that divide dim_p and are <= cap, largest first."""
    hi = max(unit, min(dim_p, cap))
    cands = [d for d in range(unit, hi + 1, unit) if dim_p % d == 0]
    return sorted(cands, reverse=True) if cands else [dim_p]


def _pick_cfg(B, OUTp, INp, *, x_bytes, y_bytes, w_stream_bytes, b_stream_bytes):
    """Generation-aware tile selection (VMEM-budgeted)."""
    try:
        vmem_cap = int(pltpu.get_tpu_info().vmem_capacity_bytes)
    except Exception:
        vmem_cap = 64 * 1024 * 1024            # conservative fallback (works everywhere)
    big_vmem = vmem_cap >= 96 * 1024 * 1024    # v5e/v6e: 128 MiB; v7x: 64 MiB
    vmem_limit = (100 if big_vmem else 52) * 1024 * 1024
    budget = vmem_limit - 6 * 1024 * 1024      # headroom for Mosaic internal scratch

    # TN: <= 256, but guarantee nj >= 2 when OUT allows it so v7x's 2nd TensorCore
    # gets work on the "parallel" axis.
    tn = _divisor_tiles(OUTp, 256)[0]
    if OUTp // tn == 1 and OUTp > 128:
        tn = _divisor_tiles(OUTp, OUTp // 2)[0]

    tk_cands = _divisor_tiles(INp, 2048 if big_vmem else 1024)

    tm_full = _round_up(B, 8)
    tm_cands = sorted({min(tm_full, c) for c in (1024, 512, 256, 128, 64, 32, 16, 8)},
                      reverse=True)

    def ws(tm, tk):
        per_step = (tm * tk * x_bytes + tn * tk * w_stream_bytes
                    + tn * b_stream_bytes + tm * tn * y_bytes)
        return 2 * per_step + tm * tn * 4      # double-buffered I/O + f32 accumulator

    # Priority: largest TM (ideally covering the whole batch, so weights are streamed and
    # sampled exactly once), then largest TK.
    tm, tk = tm_cands[-1], tk_cands[-1]
    found = False
    for tm_c in tm_cands:
        for tk_c in tk_cands:
            if ws(tm_c, tk_c) <= budget:
                tm, tk = tm_c, tk_c
                found = True
                break
        if found:
            break
    return tm, tn, tk, vmem_limit


def _make_kernel(*, out_f, in_f, tn, tk, use_sample, training,
                 out_padded, in_padded, matmul_bf16):
    need_sigma = use_sample or training
    mask_w = out_padded or in_padded

    def kernel(*refs):
        it = iter(refs)
        x_ref = next(it)
        wmu_ref = next(it)
        wrho_ref = next(it) if need_sigma else None
        weps_ref = next(it) if use_sample else None
        bmu_ref = next(it)
        brho_ref = next(it) if need_sigma else None
        beps_ref = next(it) if use_sample else None
        y_ref = next(it)
        prior_ref = next(it) if training else None
        post_ref = next(it) if training else None
        acc_ref = next(it)

        j = pl.program_id(0)   # out-feature tile (parallel)
        i = pl.program_id(1)   # batch tile
        k = pl.program_id(2)   # in-feature (reduction) tile
        nk = pl.num_programs(2)

        # --- reparameterized weight sample (VPU / EUP) ---
        wmu = wmu_ref[...]
        if use_sample:
            wsig = _softplus(wrho_ref[...].astype(jnp.float32))
            weps = weps_ref[...].astype(jnp.float32)     # eps stored bf16 -> upcast
            w = wmu + wsig * weps
        else:
            w = wmu

        # --- matmul (MXU); contraction on last dim of both operands -> no w.T transpose ---
        @pl.when(k == 0)
        def _():
            acc_ref[...] = jnp.zeros_like(acc_ref)

        if matmul_bf16:
            lhs = x_ref[...].astype(jnp.bfloat16)
            rhs = w.astype(jnp.bfloat16)
        else:
            lhs = x_ref[...]
            rhs = w
        acc_ref[...] += lax.dot_general(
            lhs, rhs,
            dimension_numbers=(((1,), (1,)), ((), ())),
            preferred_element_type=jnp.float32)

        @pl.when(k == nk - 1)
        def _():
            bmu = bmu_ref[...]
            if use_sample:
                b = bmu + (_softplus(brho_ref[...].astype(jnp.float32))
                           * beps_ref[...].astype(jnp.float32))
            else:
                b = bmu
            y_ref[...] = (acc_ref[...] + b).astype(y_ref.dtype)

        # --- training-time log-prob reductions (per-j partial sums in SMEM) ---
        if training:
            @pl.when(jnp.logical_and(i == 0, k == 0))
            def _():
                prior_ref[0, 0] = 0.0
                post_ref[0, 0] = 0.0

            # each (j, k) weight block is counted exactly once (on batch tile 0)
            @pl.when(i == 0)
            def _():
                w_prior = _mixture_logpdf(w)
                if use_sample:
                    # (w - mu)^2 / (2 sigma^2) == eps^2 / 2
                    w_post = -LOG_SQRT_2PI - jnp.log(wsig) - 0.5 * (weps * weps)
                else:
                    w_post = (-LOG_SQRT_2PI
                              - jnp.log(_softplus(wrho_ref[...].astype(jnp.float32))))

                if mask_w:
                    # only the ragged edge blocks pay the iota/compare/select cost
                    conds = []
                    if out_padded:
                        conds.append(j == pl.num_programs(0) - 1)
                    if in_padded:
                        conds.append(k == nk - 1)
                    is_edge = functools.reduce(jnp.logical_or, conds)

                    @pl.when(is_edge)
                    def _():
                        row = lax.broadcasted_iota(jnp.int32, (tn, tk), 0) + j * tn
                        col = lax.broadcasted_iota(jnp.int32, (tn, tk), 1) + k * tk
                        m = jnp.logical_and(row < out_f, col < in_f)
                        prior_ref[0, 0] += jnp.sum(jnp.where(m, w_prior, 0.0))
                        post_ref[0, 0] += jnp.sum(jnp.where(m, w_post, 0.0))

                    @pl.when(jnp.logical_not(is_edge))
                    def _():
                        prior_ref[0, 0] += jnp.sum(w_prior)
                        post_ref[0, 0] += jnp.sum(w_post)
                else:
                    prior_ref[0, 0] += jnp.sum(w_prior)
                    post_ref[0, 0] += jnp.sum(w_post)

            # this j tile's bias slice is counted exactly once (batch tile 0, k tile 0)
            @pl.when(jnp.logical_and(i == 0, k == 0))
            def _():
                bmu = bmu_ref[...]
                bsig = _softplus(brho_ref[...].astype(jnp.float32))
                if use_sample:
                    beps = beps_ref[...].astype(jnp.float32)
                    b = bmu + bsig * beps
                    b_post = -LOG_SQRT_2PI - jnp.log(bsig) - 0.5 * (beps * beps)
                else:
                    b = bmu
                    b_post = -LOG_SQRT_2PI - jnp.log(bsig)
                b_prior = _mixture_logpdf(b)
                if out_padded:
                    bcol = lax.broadcasted_iota(jnp.int32, (1, tn), 1) + j * tn
                    bm = bcol < out_f
                    b_prior = jnp.where(bm, b_prior, 0.0)
                    b_post = jnp.where(bm, b_post, 0.0)
                prior_ref[0, 0] += jnp.sum(b_prior)
                post_ref[0, 0] += jnp.sum(b_post)

    return kernel


def prepare_bayesian_linear_params(w_mu, w_rho, b_mu, b_rho, eps_w, eps_b,
                                   eps_dtype=jnp.bfloat16):
    """Pad (and cast eps) ONCE, outside the per-call forward hot path."""
    OUT, IN = w_mu.shape
    OUTp, INp = _round_up(OUT, 128), _round_up(IN, 128)

    def pad_w(a, dtype=None):
        a = jnp.pad(a, ((0, OUTp - OUT), (0, INp - IN)))
        return a.astype(dtype) if dtype is not None else a

    def pad_b(a, dtype=None):
        a = jnp.pad(a, (0, OUTp - OUT)).reshape(1, OUTp)
        return a.astype(dtype) if dtype is not None else a

    return dict(
        w_mu=pad_w(w_mu), w_rho=pad_w(w_rho), eps_w=pad_w(eps_w, eps_dtype),
        b_mu=pad_b(b_mu), b_rho=pad_b(b_rho), eps_b=pad_b(eps_b, eps_dtype))


@functools.partial(jax.jit,
                   static_argnames=("out_features", "in_features",
                                    "use_sample", "training", "matmul_bf16"))
def bayesian_linear_forward(x, params, *, out_features, in_features,
                            use_sample=True, training=True, matmul_bf16=False):
    B = x.shape[0]
    OUTp, INp = params["w_mu"].shape
    need_sigma = use_sample or training

    eps_bytes = params["eps_w"].dtype.itemsize
    w_stream_bytes = 4 + (4 if need_sigma else 0) + (eps_bytes if use_sample else 0)
    b_stream_bytes = w_stream_bytes
    x_bytes = x.dtype.itemsize
    y_bytes = x_bytes

    TM, TN, TK, vmem_limit = _pick_cfg(
        B, OUTp, INp, x_bytes=x_bytes, y_bytes=y_bytes,
        w_stream_bytes=w_stream_bytes, b_stream_bytes=b_stream_bytes)

    Bp = _round_up(B, TM)
    nj, ni, nk = OUTp // TN, Bp // TM, INp // TK

    xp = jnp.pad(x, ((0, Bp - B), (0, INp - x.shape[1])))

    x_spec = pl.BlockSpec((TM, TK), lambda j, i, k: (i, k))
    w_spec = pl.BlockSpec((TN, TK), lambda j, i, k: (j, k))
    b_spec = pl.BlockSpec((1, TN), lambda j, i, k: (0, j))

    inputs = [xp, params["w_mu"]]
    in_specs = [x_spec, w_spec]
    if need_sigma:
        inputs.append(params["w_rho"]); in_specs.append(w_spec)
    if use_sample:
        inputs.append(params["eps_w"]); in_specs.append(w_spec)
    inputs.append(params["b_mu"]); in_specs.append(b_spec)
    if need_sigma:
        inputs.append(params["b_rho"]); in_specs.append(b_spec)
    if use_sample:
        inputs.append(params["eps_b"]); in_specs.append(b_spec)

    out_shapes = [jax.ShapeDtypeStruct((Bp, OUTp), x.dtype)]
    out_specs = [pl.BlockSpec((TM, TN), lambda j, i, k: (i, j))]
    if training:
        smem_spec = pl.BlockSpec((1, 1), lambda j, i, k: (j, 0),
                                 memory_space=pltpu.MemorySpace.SMEM)
        out_shapes += [jax.ShapeDtypeStruct((nj, 1), jnp.float32)] * 2
        out_specs += [smem_spec, smem_spec]

    kernel = _make_kernel(out_f=out_features, in_f=in_features, tn=TN, tk=TK,
                          use_sample=use_sample, training=training,
                          out_padded=(OUTp != out_features),
                          in_padded=(INp != in_features),
                          matmul_bf16=matmul_bf16)

    # advisory cost estimate so XLA can schedule around the custom call
    flops = 2 * Bp * INp * OUTp + (4 * OUTp * INp if use_sample else 0)
    transcendentals = ((2 * OUTp * INp if need_sigma else 0)
                       + (3 * OUTp * INp if training else 0))
    bytes_accessed = int(Bp * INp * x_bytes + OUTp * INp * w_stream_bytes
                         + OUTp * b_stream_bytes + Bp * OUTp * y_bytes)
    cost = pl.CostEstimate(flops=int(flops), transcendentals=int(transcendentals),
                           bytes_accessed=bytes_accessed)

    # j (out tiles) can always shard across v7x's two TensorCores; the batch axis is only
    # parallel when there are no cross-batch-tile scalar accumulations (i.e. inference).
    dims = (("parallel", "arbitrary", "arbitrary") if training
            else ("parallel", "parallel", "arbitrary"))

    outs = pl.pallas_call(
        kernel,
        out_shape=tuple(out_shapes),
        grid_spec=pltpu.PrefetchScalarGridSpec(
            num_scalar_prefetch=0,
            grid=(nj, ni, nk),
            in_specs=in_specs,
            out_specs=tuple(out_specs),
            scratch_shapes=[pltpu.VMEM((TM, TN), jnp.float32)]),
        compiler_params=pltpu.CompilerParams(
            dimension_semantics=dims,
            vmem_limit_bytes=vmem_limit),
        cost_estimate=cost,
    )(*inputs)

    y = outs[0][:B, :out_features]
    if training:
        log_prior = jnp.sum(outs[1])
        log_post = jnp.sum(outs[2])
    else:
        log_prior = jnp.float32(0.0)
        log_post = jnp.float32(0.0)
    return y, log_prior, log_post


if __name__ == "__main__":
    in_features, out_features, batch = 32, 16, 8

    key = jax.random.PRNGKey(0)
    k_wm, k_wr, k_bm, k_br, k_ew, k_eb, k_x = jax.random.split(key, 7)

    # deterministic parameter init matching nn.Parameter(...).uniform_(...) shapes/ranges
    w_mu = jax.random.uniform(k_wm, (out_features, in_features), jnp.float32, -0.2, 0.2)
    w_rho = jax.random.uniform(k_wr, (out_features, in_features), jnp.float32, -2.0, 2.0)
    b_mu = jax.random.uniform(k_bm, (out_features,), jnp.float32, -0.2, 0.2)
    b_rho = jax.random.uniform(k_br, (out_features,), jnp.float32, -2.0, 2.0)

    # deterministic epsilon draws (the cached weight_sample / bias_sample)
    eps_w = jax.random.normal(k_ew, (out_features, in_features), jnp.float32)
    eps_b = jax.random.normal(k_eb, (out_features,), jnp.float32)

    x = jax.random.normal(k_x, (batch, in_features), jnp.float32)

    # pad/cast parameters once, outside the hot path
    params = prepare_bayesian_linear_params(w_mu, w_rho, b_mu, b_rho, eps_w, eps_b)
    jax.block_until_ready(params)

    y, log_prior, log_post = bayesian_linear_forward(
        x, params, out_features=out_features, in_features=in_features,
        use_sample=True, training=True)
    jax.block_until_ready((y, log_prior, log_post))

    # pure-JAX reference; it uses the same bf16-rounded eps the kernel streams from HBM
    eps_w_q = eps_w.astype(jnp.bfloat16).astype(jnp.float32)
    eps_b_q = eps_b.astype(jnp.bfloat16).astype(jnp.float32)
    sig_w = jnp.log1p(jnp.exp(w_rho))
    sig_b = jnp.log1p(jnp.exp(b_rho))
    w_ref = w_mu + sig_w * eps_w_q
    b_ref = b_mu + sig_b * eps_b_q
    y_ref = x @ w_ref.T + b_ref

    def ref_gauss_logprob(v, mu, sigma):
        return jnp.sum(-LOG_SQRT_2PI - jnp.log(sigma) - (v - mu) ** 2 / (2 * sigma ** 2))

    def ref_mix_logprob(v):
        p1 = jnp.exp(-v ** 2 / (2 * SIGMA1 ** 2)) / (math.sqrt(2 * math.pi) * SIGMA1)
        p2 = jnp.exp(-v ** 2 / (2 * SIGMA2 ** 2)) / (math.sqrt(2 * math.pi) * SIGMA2)
        return jnp.sum(jnp.log(PI * p1 + (1 - PI) * p2))

    lp_ref = ref_mix_logprob(w_ref) + ref_mix_logprob(b_ref)
    lq_ref = ref_gauss_logprob(w_ref, w_mu, sig_w) + ref_gauss_logprob(b_ref, b_mu, sig_b)

    assert jnp.allclose(y, y_ref, atol=1e-4, rtol=1e-4)
    assert jnp.allclose(log_prior, lp_ref, atol=1e-3, rtol=1e-4)
    assert jnp.allclose(log_post, lq_ref, atol=1e-3, rtol=1e-4)

    # eval path (use_sample=False, training=False): no reductions, no rho/eps DMAs
    y_mean, lp0, lq0 = bayesian_linear_forward(
        x, params, out_features=out_features, in_features=in_features,
        use_sample=False, training=False)
    jax.block_until_ready(y_mean)
    assert jnp.allclose(y_mean, x @ w_mu.T + b_mu, atol=1e-4, rtol=1e-4)
    assert float(lp0) == 0.0 and float(lq0) == 0.0

    # mean path while training (log-probs evaluated at the mean weights)
    y_m2, lp_m, lq_m = bayesian_linear_forward(
        x, params, out_features=out_features, in_features=in_features,
        use_sample=False, training=True)
    jax.block_until_ready((y_m2, lp_m, lq_m))
    lp_m_ref = ref_mix_logprob(w_mu) + ref_mix_logprob(b_mu)
    lq_m_ref = (jnp.sum(-LOG_SQRT_2PI - jnp.log(sig_w))
                + jnp.sum(-LOG_SQRT_2PI - jnp.log(sig_b)))
    assert jnp.allclose(y_m2, x @ w_mu.T + b_mu, atol=1e-4, rtol=1e-4)
    assert jnp.allclose(lp_m, lp_m_ref, atol=1e-3, rtol=1e-4)
    assert jnp.allclose(lq_m, lq_m_ref, atol=1e-3, rtol=1e-4)

    # optional bf16-MXU path (flagged; looser tolerance, inference only here)
    y_bf, _, _ = bayesian_linear_forward(
        x, params, out_features=out_features, in_features=in_features,
        use_sample=True, training=False, matmul_bf16=True)
    jax.block_until_ready(y_bf)
    assert y_bf.shape == y_ref.shape
    assert jnp.allclose(y_bf, y_ref, atol=5e-2, rtol=5e-2)

    print("KERNEL_OK")
</pallas_src>

<mosaic_0001>
module attributes {stable_mosaic.version = 11 : i64} {
  func.func @kernel(%arg0: i32, %arg1: i32, %arg2: i32, %arg3: memref<8x128xf32, #tpu.memory_space<vmem>>, %arg4: memref<128x128xf32, #tpu.memory_space<vmem>>, %arg5: memref<128x128xf32, #tpu.memory_space<vmem>>, %arg6: memref<128x128xbf16, #tpu.memory_space<vmem>>, %arg7: memref<1x128xf32, #tpu.memory_space<vmem>>, %arg8: memref<1x128xf32, #tpu.memory_space<vmem>>, %arg9: memref<1x128xbf16, #tpu.memory_space<vmem>>, %arg10: memref<8x128xf32, #tpu.memory_space<vmem>>, %arg11: memref<1x1xf32, #tpu.memory_space<smem>>, %arg12: memref<1x1xf32, #tpu.memory_space<smem>>, %arg13: memref<8x128xf32, #tpu.memory_space<vmem>>) attributes {dimension_semantics = [#tpu.dimension_semantics<parallel>, #tpu.dimension_semantics<arbitrary>, #tpu.dimension_semantics<arbitrary>], iteration_bounds = array<i64: 1, 1, 1>, scalar_prefetch = 0 : i64, scratch_operands = 1 : i64, tpu.core_type = #tpu.core_type<tc>, window_params = [{transform_indices = @transform_0, window_bounds = array<i64: 8, 128>}, {transform_indices = @transform_1, window_bounds = array<i64: 128, 128>}, {transform_indices = @transform_2, window_bounds = array<i64: 128, 128>}, {transform_indices = @transform_3, window_bounds = array<i64: 128, 128>}, {transform_indices = @transform_4, window_bounds = array<i64: 1, 128>}, {transform_indices = @transform_5, window_bounds = array<i64: 1, 128>}, {transform_indices = @transform_6, window_bounds = array<i64: 1, 128>}, {transform_indices = @transform_7, window_bounds = array<i64: 8, 128>}, {transform_indices = @transform_8, window_bounds = array<i64: 1, 1>}, {transform_indices = @transform_9, window_bounds = array<i64: 1, 1>}]} {
    %c0 = arith.constant 0 : index
    %c0_0 = arith.constant 0 : index
    %0 = vector.load %arg4[%c0, %c0_0] : memref<128x128xf32, #tpu.memory_space<vmem>>, vector<128x128xf32>
    %c0_1 = arith.constant 0 : index
    %c0_2 = arith.constant 0 : index
    %1 = vector.load %arg5[%c0_1, %c0_2] : memref<128x128xf32, #tpu.memory_space<vmem>>, vector<128x128xf32>
    %cst = arith.constant 0.000000e+00 : f32
    %2 = vector.broadcast %cst : f32 to vector<128x128xf32>
    %3 = arith.maximumf %1, %2 : vector<128x128xf32>
    %4 = math.absf %1 : vector<128x128xf32>
    %cst_3 = arith.constant 0.000000e+00 : f32
    %5 = vector.broadcast %cst_3 : f32 to vector<128x128xf32>
    %6 = arith.subf %5, %4 : vector<128x128xf32>
    %7 = math.exp %6 : vector<128x128xf32>
    %8 = math.log1p %7 : vector<128x128xf32>
    %9 = arith.addf %3, %8 : vector<128x128xf32>
    %c0_4 = arith.constant 0 : index
    %c0_5 = arith.constant 0 : index
    %10 = vector.load %arg6[%c0_4, %c0_5] : memref<128x128xbf16, #tpu.memory_space<vmem>>, vector<128x128xbf16>
    %11 = arith.extf %10 : vector<128x128xbf16> to vector<128x128xf32>
    %12 = arith.mulf %9, %11 : vector<128x128xf32>
    %13 = arith.addf %0, %12 : vector<128x128xf32>
    %c0_i32 = arith.constant 0 : i32
    %14 = arith.cmpi eq, %arg2, %c0_i32 : i32
    %15 = arith.extui %14 : i1 to i32
    %c0_i32_6 = arith.constant 0 : i32
    %16 = arith.cmpi ne, %15, %c0_i32_6 : i32
    scf.if %16 {
      %cst_24 = arith.constant 0.000000e+00 : f32
      %38 = vector.broadcast %cst_24 : f32 to vector<8x128xf32>
      %c0_25 = arith.constant 0 : index
      %c0_26 = arith.constant 0 : index
      %39 = vector.load %arg13[%c0_25, %c0_26] : memref<8x128xf32, #tpu.memory_space<vmem>>, vector<8x128xf32>
      tpu.vector_store %arg13[%c0_25, %c0_26], %38 {strides = array<i32>} : memref<8x128xf32, #tpu.memory_space<vmem>>, vector<8x128xf32>,
    } else {
    }
    %c0_7 = arith.constant 0 : index
    %c0_8 = arith.constant 0 : index
    %17 = vector.load %arg3[%c0_7, %c0_8] : memref<8x128xf32, #tpu.memory_space<vmem>>, vector<8x128xf32>
    %c0_9 = arith.constant 0 : index
    %c0_10 = arith.constant 0 : index
    %18 = vector.load %arg13[%c0_9, %c0_10] : memref<8x128xf32, #tpu.memory_space<vmem>>, vector<8x128xf32>
    %cst_11 = arith.constant dense<0.000000e+00> : vector<8x128xf32>
    %19 = tpu.matmul %17, %13, %cst_11 {dimension_numbers = #tpu.dot_dimension_numbers<[1], [1], [0], [0], [0, 0, 1, 0], [], []>} : vector<8x128xf32>, vector<128x128xf32>, vector<8x128xf32> -> vector<8x128xf32>
    %20 = arith.addf %18, %19 : vector<8x128xf32>
    %c0_12 = arith.constant 0 : index
    %c0_13 = arith.constant 0 : index
    %21 = vector.load %arg13[%c0_12, %c0_13] : memref<8x128xf32, #tpu.memory_space<vmem>>, vector<8x128xf32>
    tpu.vector_store %arg13[%c0_12, %c0_13], %20 {strides = array<i32>} : memref<8x128xf32, #tpu.memory_space<vmem>>, vector<8x128xf32>,
    %c0_i32_14 = arith.constant 0 : i32
    %22 = arith.cmpi eq, %arg2, %c0_i32_14 : i32
    %23 = arith.extui %22 : i1 to i32
    %c0_i32_15 = arith.constant 0 : i32
    %24 = arith.cmpi ne, %23, %c0_i32_15 : i32
    scf.if %24 {
      %c0_24 = arith.constant 0 : index
      %c0_25 = arith.constant 0 : index
      %38 = vector.load %arg7[%c0_24, %c0_25] : memref<1x128xf32, #tpu.memory_space<vmem>>, vector<1x128xf32>
      %c0_26 = arith.constant 0 : index
      %c0_27 = arith.constant 0 : index
      %39 = vector.load %arg8[%c0_26, %c0_27] : memref<1x128xf32, #tpu.memory_space<vmem>>, vector<1x128xf32>
      %cst_28 = arith.constant 0.000000e+00 : f32
      %40 = vector.broadcast %cst_28 : f32 to vector<1x128xf32>
      %41 = arith.maximumf %39, %40 : vector<1x128xf32>
      %42 = math.absf %39 : vector<1x128xf32>
      %cst_29 = arith.constant 0.000000e+00 : f32
      %43 = vector.broadcast %cst_29 : f32 to vector<1x128xf32>
      %44 = arith.subf %43, %42 : vector<1x128xf32>
      %45 = math.exp %44 : vector<1x128xf32>
      %46 = math.log1p %45 : vector<1x128xf32>
      %47 = arith.addf %41, %46 : vector<1x128xf32>
      %c0_30 = arith.constant 0 : index
      %c0_31 = arith.constant 0 : index
      %48 = vector.load %arg9[%c0_30, %c0_31] : memref<1x128xbf16, #tpu.memory_space<vmem>>, vector<1x128xbf16>
      %49 = arith.extf %48 : vector<1x128xbf16> to vector<1x128xf32>
      %50 = arith.mulf %47, %49 : vector<1x128xf32>
      %51 = arith.addf %38, %50 : vector<1x128xf32>
      %c0_32 = arith.constant 0 : index
      %c0_33 = arith.constant 0 : index
      %52 = vector.load %arg13[%c0_32, %c0_33] : memref<8x128xf32, #tpu.memory_space<vmem>>, vector<8x128xf32>
      %53 = vector.broadcast %51 : vector<1x128xf32> to vector<8x128xf32>
      %54 = arith.addf %52, %53 : vector<8x128xf32>
      %c0_34 = arith.constant 0 : index
      %c0_35 = arith.constant 0 : index
      %55 = vector.load %arg10[%c0_34, %c0_35] : memref<8x128xf32, #tpu.memory_space<vmem>>, vector<8x128xf32>
      tpu.vector_store %arg10[%c0_34, %c0_35], %54 {strides = array<i32>} : memref<8x128xf32, #tpu.memory_space<vmem>>, vector<8x128xf32>,
    } else {
    }
    %c0_i32_16 = arith.constant 0 : i32
    %25 = arith.cmpi eq, %arg1, %c0_i32_16 : i32
    %c0_i32_17 = arith.constant 0 : i32
    %26 = arith.cmpi eq, %arg2, %c0_i32_17 : i32
    %27 = arith.andi %25, %26 : i1
    %28 = arith.extui %27 : i1 to i32
    %c0_i32_18 = arith.constant 0 : i32
    %29 = arith.cmpi ne, %28, %c0_i32_18 : i32
    scf.if %29 {
      %cst_24 = arith.constant 0.000000e+00 : f32
      %c0_25 = arith.constant 0 : index
      %c0_26 = arith.constant 0 : index
      %38 = memref.load %arg11[%c0_25, %c0_26] : memref<1x1xf32, #tpu.memory_space<smem>>
      memref.store %cst_24, %arg11[%c0_25, %c0_26] : memref<1x1xf32, #tpu.memory_space<smem>>
      %cst_27 = arith.constant 0.000000e+00 : f32
      %c0_28 = arith.constant 0 : index
      %c0_29 = arith.constant 0 : index
      %39 = memref.load %arg12[%c0_28, %c0_29] : memref<1x1xf32, #tpu.memory_space<smem>>
      memref.store %cst_27, %arg12[%c0_28, %c0_29] : memref<1x1xf32, #tpu.memory_space<smem>>
    } else {
    }
    %c0_i32_19 = arith.constant 0 : i32
    %30 = arith.cmpi eq, %arg1, %c0_i32_19 : i32
    %31 = arith.extui %30 : i1 to i32
    %c0_i32_20 = arith.constant 0 : i32
    %32 = arith.cmpi ne, %31, %c0_i32_20 : i32
    scf.if %32 {
      %38 = arith.mulf %13, %13 : vector<128x128xf32>
      %cst_24 = arith.constant -0.0676676407 : f32
      %39 = vector.broadcast %cst_24 : f32 to vector<128x128xf32>
      %40 = arith.mulf %39, %38 : vector<128x128xf32>
      %cst_25 = arith.constant -0.432332367 : f32
      %41 = vector.broadcast %cst_25 : f32 to vector<128x128xf32>
      %42 = arith.mulf %41, %38 : vector<128x128xf32>
      %43 = math.exp %42 : vector<128x128xf32>
      %cst_26 = arith.constant 0.199471146 : f32
      %44 = vector.broadcast %cst_26 : f32 to vector<128x128xf32>
      %45 = arith.mulf %44, %43 : vector<128x128xf32>
      %cst_27 = arith.constant 0.0733813345 : f32
      %46 = vector.broadcast %cst_27 : f32 to vector<128x128xf32>
      %47 = arith.addf %45, %46 : vector<128x128xf32>
      %48 = math.log %47 : vector<128x128xf32>
      %49 = arith.addf %40, %48 : vector<128x128xf32>
      %50 = math.log %9 : vector<128x128xf32>
      %cst_28 = arith.constant -0.918938517 : f32
      %51 = vector.broadcast %cst_28 : f32 to vector<128x128xf32>
      %52 = arith.subf %51, %50 : vector<128x128xf32>
      %53 = arith.mulf %11, %11 : vector<128x128xf32>
      %cst_29 = arith.constant 5.000000e-01 : f32
      %54 = vector.broadcast %cst_29 : f32 to vector<128x128xf32>
      %55 = arith.mulf %54, %53 : vector<128x128xf32>
      %56 = arith.subf %52, %55 : vector<128x128xf32>
      %c0_i32_30 = arith.constant 0 : i32
      %57 = arith.cmpi eq, %arg0, %c0_i32_30 : i32
      %c0_i32_31 = arith.constant 0 : i32
      %58 = arith.cmpi eq, %arg2, %c0_i32_31 : i32
      %59 = arith.ori %57, %58 : i1
      %60 = arith.extui %59 : i1 to i32
      %c0_i32_32 = arith.constant 0 : i32
      %61 = arith.cmpi ne, %60, %c0_i32_32 : i32
      scf.if %61 {
        %65 = tpu.iota {dimensions = array<i32: 0>} : vector<128x128xi32>
        %c128_i32 = arith.constant 128 : i32
        %66 = arith.muli %arg0, %c128_i32 : i32
        %67 = vector.broadcast %66 : i32 to vector<128x128xi32>
        %68 = arith.addi %65, %67 : vector<128x128xi32>
        %69 = tpu.iota {dimensions = array<i32: 1>} : vector<128x128xi32>
        %c128_i32_34 = arith.constant 128 : i32
        %70 = arith.muli %arg2, %c128_i32_34 : i32
        %71 = vector.broadcast %70 : i32 to vector<128x128xi32>
        %72 = arith.addi %69, %71 : vector<128x128xi32>
        %c16_i32 = arith.constant 16 : i32
        %73 = vector.broadcast %c16_i32 : i32 to vector<128x128xi32>
        %74 = arith.cmpi slt, %68, %73 : vector<128x128xi32>
        %c32_i32 = arith.constant 32 : i32
        %75 = vector.broadcast %c32_i32 : i32 to vector<128x128xi32>
        %76 = arith.cmpi slt, %72, %75 : vector<128x128xi32>
        %77 = arith.andi %74, %76 : vector<128x128xi1>
        %c0_35 = arith.constant 0 : index
        %c0_36 = arith.constant 0 : index
        %78 = memref.load %arg11[%c0_35, %c0_36] : memref<1x1xf32, #tpu.memory_space<smem>>
        %cst_37 = arith.constant 0.000000e+00 : f32
        %79 = vector.broadcast %cst_37 : f32 to vector<128x128xf32>
        %80 = arith.select %77, %49, %79 : vector<128x128xi1>, vector<128x128xf32>
        %81 = vector.shape_cast %80 : vector<128x128xf32> to vector<1x128x128xf32>
        %cst_38 = arith.constant dense<0.000000e+00> : vector<1xf32>
        %82 = vector.multi_reduction <add>, %81, %cst_38 [1, 2] : vector<1x128x128xf32> to vector<1xf32>
        %83 = vector.shape_cast %82 : vector<1xf32> to vector<1x1x1xf32>
        %84 = vector.extract %83[0, 0, 0] : f32 from vector<1x1x1xf32>
        %85 = arith.addf %78, %84 : f32
        %c0_39 = arith.constant 0 : index
        %c0_40 = arith.constant 0 : index
        %86 = memref.load %arg11[%c0_39, %c0_40] : memref<1x1xf32, #tpu.memory_space<smem>>
        memref.store %85, %arg11[%c0_39, %c0_40] : memref<1x1xf32, #tpu.memory_space<smem>>
        %c0_41 = arith.constant 0 : index
        %c0_42 = arith.constant 0 : index
        %87 = memref.load %arg12[%c0_41, %c0_42] : memref<1x1xf32, #tpu.memory_space<smem>>
        %cst_43 = arith.constant 0.000000e+00 : f32
        %88 = vector.broadcast %cst_43 : f32 to vector<128x128xf32>
        %89 = arith.select %77, %56, %88 : vector<128x128xi1>, vector<128x128xf32>
        %90 = vector.shape_cast %89 : vector<128x128xf32> to vector<1x128x128xf32>
        %cst_44 = arith.constant dense<0.000000e+00> : vector<1xf32>
        %91 = vector.multi_reduction <add>, %90, %cst_44 [1, 2] : vector<1x128x128xf32> to vector<1xf32>
        %92 = vector.shape_cast %91 : vector<1xf32> to vector<1x1x1xf32>
        %93 = vector.extract %92[0, 0, 0] : f32 from vector<1x1x1xf32>
        %94 = arith.addf %87, %93 : f32
        %c0_45 = arith.constant 0 : index
        %c0_46 = arith.constant 0 : index
        %95 = memref.load %arg12[%c0_45, %c0_46] : memref<1x1xf32, #tpu.memory_space<smem>>
        memref.store %94, %arg12[%c0_45, %c0_46] : memref<1x1xf32, #tpu.memory_space<smem>>
      } else {
      }
      %true = arith.constant true
      %62 = arith.xori %59, %true : i1
      %63 = arith.extui %62 : i1 to i32
      %c0_i32_33 = arith.constant 0 : i32
      %64 = arith.cmpi ne, %63, %c0_i32_33 : i32
      scf.if %64 {
        %c0_34 = arith.constant 0 : index
        %c0_35 = arith.constant 0 : index
        %65 = memref.load %arg11[%c0_34, %c0_35] : memref<1x1xf32, #tpu.memory_space<smem>>
        %66 = vector.shape_cast %49 : vector<128x128xf32> to vector<1x128x128xf32>
        %cst_36 = arith.constant dense<0.000000e+00> : vector<1xf32>
        %67 = vector.multi_reduction <add>, %66, %cst_36 [1, 2] : vector<1x128x128xf32> to vector<1xf32>
        %68 = vector.shape_cast %67 : vector<1xf32> to vector<1x1x1xf32>
        %69 = vector.extract %68[0, 0, 0] : f32 from vector<1x1x1xf32>
        %70 = arith.addf %65, %69 : f32
        %c0_37 = arith.constant 0 : index
        %c0_38 = arith.constant 0 : index
        %71 = memref.load %arg11[%c0_37, %c0_38] : memref<1x1xf32, #tpu.memory_space<smem>>
        memref.store %70, %arg11[%c0_37, %c0_38] : memref<1x1xf32, #tpu.memory_space<smem>>
        %c0_39 = arith.constant 0 : index
        %c0_40 = arith.constant 0 : index
        %72 = memref.load %arg12[%c0_39, %c0_40] : memref<1x1xf32, #tpu.memory_space<smem>>
        %73 = vector.shape_cast %56 : vector<128x128xf32> to vector<1x128x128xf32>
        %cst_41 = arith.constant dense<0.000000e+00> : vector<1xf32>
        %74 = vector.multi_reduction <add>, %73, %cst_41 [1, 2] : vector<1x128x128xf32> to vector<1xf32>
        %75 = vector.shape_cast %74 : vector<1xf32> to vector<1x1x1xf32>
        %76 = vector.extract %75[0, 0, 0] : f32 from vector<1x1x1xf32>
        %77 = arith.addf %72, %76 : f32
        %c0_42 = arith.constant 0 : index
        %c0_43 = arith.constant 0 : index
        %78 = memref.load %arg12[%c0_42, %c0_43] : memref<1x1xf32, #tpu.memory_space<smem>>
        memref.store %77, %arg12[%c0_42, %c0_43] : memref<1x1xf32, #tpu.memory_space<smem>>
      } else {
      }
    } else {
    }
    %c0_i32_21 = arith.constant 0 : i32
    %33 = arith.cmpi eq, %arg1, %c0_i32_21 : i32
    %c0_i32_22 = arith.constant 0 : i32
    %34 = arith.cmpi eq, %arg2, %c0_i32_22 : i32
    %35 = arith.andi %33, %34 : i1
    %36 = arith.extui %35 : i1 to i32
    %c0_i32_23 = arith.constant 0 : i32
    %37 = arith.cmpi ne, %36, %c0_i32_23 : i32
    scf.if %37 {
      %c0_24 = arith.constant 0 : index
      %c0_25 = arith.constant 0 : index
      %38 = vector.load %arg7[%c0_24, %c0_25] : memref<1x128xf32, #tpu.memory_space<vmem>>, vector<1x128xf32>
      %c0_26 = arith.constant 0 : index
      %c0_27 = arith.constant 0 : index
      %39 = vector.load %arg8[%c0_26, %c0_27] : memref<1x128xf32, #tpu.memory_space<vmem>>, vector<1x128xf32>
      %cst_28 = arith.constant 0.000000e+00 : f32
      %40 = vector.broadcast %cst_28 : f32 to vector<1x128xf32>
      %41 = arith.maximumf %39, %40 : vector<1x128xf32>
      %42 = math.absf %39 : vector<1x128xf32>
      %cst_29 = arith.constant 0.000000e+00 : f32
      %43 = vector.broadcast %cst_29 : f32 to vector<1x128xf32>
      %44 = arith.subf %43, %42 : vector<1x128xf32>
      %45 = math.exp %44 : vector<1x128xf32>
      %46 = math.log1p %45 : vector<1x128xf32>
      %47 = arith.addf %41, %46 : vector<1x128xf32>
      %c0_30 = arith.constant 0 : index
      %c0_31 = arith.constant 0 : index
      %48 = vector.load %arg9[%c0_30, %c0_31] : memref<1x128xbf16, #tpu.memory_space<vmem>>, vector<1x128xbf16>
      %49 = arith.extf %48 : vector<1x128xbf16> to vector<1x128xf32>
      %50 = arith.mulf %47, %49 : vector<1x128xf32>
      %51 = arith.addf %38, %50 : vector<1x128xf32>
      %52 = math.log %47 : vector<1x128xf32>
      %cst_32 = arith.constant -0.918938517 : f32
      %53 = vector.broadcast %cst_32 : f32 to vector<1x128xf32>
      %54 = arith.subf %53, %52 : vector<1x128xf32>
      %55 = arith.mulf %49, %49 : vector<1x128xf32>
      %cst_33 = arith.constant 5.000000e-01 : f32
      %56 = vector.broadcast %cst_33 : f32 to vector<1x128xf32>
      %57 = arith.mulf %56, %55 : vector<1x128xf32>
      %58 = arith.subf %54, %57 : vector<1x128xf32>
      %59 = arith.mulf %51, %51 : vector<1x128xf32>
      %cst_34 = arith.constant -0.0676676407 : f32
      %60 = vector.broadcast %cst_34 : f32 to vector<1x128xf32>
      %61 = arith.mulf %60, %59 : vector<1x128xf32>
      %cst_35 = arith.constant -0.432332367 : f32
      %62 = vector.broadcast %cst_35 : f32 to vector<1x128xf32>
      %63 = arith.mulf %62, %59 : vector<1x128xf32>
      %64 = math.exp %63 : vector<1x128xf32>
      %cst_36 = arith.constant 0.199471146 : f32
      %65 = vector.broadcast %cst_36 : f32 to vector<1x128xf32>
      %66 = arith.mulf %65, %64 : vector<1x128xf32>
      %cst_37 = arith.constant 0.0733813345 : f32
      %67 = vector.broadcast %cst_37 : f32 to vector<1x128xf32>
      %68 = arith.addf %66, %67 : vector<1x128xf32>
      %69 = math.log %68 : vector<1x128xf32>
      %70 = arith.addf %61, %69 : vector<1x128xf32>
      %71 = tpu.iota {dimensions = array<i32: 1>} : vector<1x128xi32>
      %c128_i32 = arith.constant 128 : i32
      %72 = arith.muli %arg0, %c128_i32 : i32
      %73 = vector.broadcast %72 : i32 to vector<1x128xi32>
      %74 = arith.addi %71, %73 : vector<1x128xi32>
      %c16_i32 = arith.constant 16 : i32
      %75 = vector.broadcast %c16_i32 : i32 to vector<1x128xi32>
      %76 = arith.cmpi slt, %74, %75 : vector<1x128xi32>
      %cst_38 = arith.constant 0.000000e+00 : f32
      %77 = vector.broadcast %cst_38 : f32 to vector<1x128xf32>
      %78 = arith.select %76, %70, %77 : vector<1x128xi1>, vector<1x128xf32>
      %cst_39 = arith.constant 0.000000e+00 : f32
      %79 = vector.broadcast %cst_39 : f32 to vector<1x128xf32>
      %80 = arith.select %76, %58, %79 : vector<1x128xi1>, vector<1x128xf32>
      %c0_40 = arith.constant 0 : index
      %c0_41 = arith.constant 0 : index
      %81 = memref.load %arg11[%c0_40, %c0_41] : memref<1x1xf32, #tpu.memory_space<smem>>
      %82 = vector.shape_cast %78 : vector<1x128xf32> to vector<1x1x128xf32>
      %cst_42 = arith.constant dense<0.000000e+00> : vector<1xf32>
      %83 = vector.multi_reduction <add>, %82, %cst_42 [1, 2] : vector<1x1x128xf32> to vector<1xf32>
      %84 = vector.shape_cast %83 : vector<1xf32> to vector<1x1x1xf32>
      %85 = vector.extract %84[0, 0, 0] : f32 from vector<1x1x1xf32>
      %86 = arith.addf %81, %85 : f32
      %c0_43 = arith.constant 0 : index
      %c0_44 = arith.constant 0 : index
      %87 = memref.load %arg11[%c0_43, %c0_44] : memref<1x1xf32, #tpu.memory_space<smem>>
      memref.store %86, %arg11[%c0_43, %c0_44] : memref<1x1xf32, #tpu.memory_space<smem>>
      %c0_45 = arith.constant 0 : index
      %c0_46 = arith.constant 0 : index
      %88 = memref.load %arg12[%c0_45, %c0_46] : memref<1x1xf32, #tpu.memory_space<smem>>
      %89 = vector.shape_cast %80 : vector<1x128xf32> to vector<1x1x128xf32>
      %cst_47 = arith.constant dense<0.000000e+00> : vector<1xf32>
      %90 = vector.multi_reduction <add>, %89, %cst_47 [1, 2] : vector<1x1x128xf32> to vector<1xf32>
      %91 = vector.shape_cast %90 : vector<1xf32> to vector<1x1x1xf32>
      %92 = vector.extract %91[0, 0, 0] : f32 from vector<1x1x1xf32>
      %93 = arith.addf %88, %92 : f32
      %c0_48 = arith.constant 0 : index
      %c0_49 = arith.constant 0 : index
      %94 = memref.load %arg12[%c0_48, %c0_49] : memref<1x1xf32, #tpu.memory_space<smem>>
      memref.store %93, %arg12[%c0_48, %c0_49] : memref<1x1xf32, #tpu.memory_space<smem>>
    } else {
    }
    return
  }
  func.func @transform_0(%arg0: i32, %arg1: i32, %arg2: i32) -> (i32, i32) {
    %c0_i32 = arith.constant 0 : i32
    return %arg1, %arg2 : i32, i32
  }
  func.func @transform_1(%arg0: i32, %arg1: i32, %arg2: i32) -> (i32, i32) {
    %c0_i32 = arith.constant 0 : i32
    return %arg0, %arg2 : i32, i32
  }
  func.func @transform_2(%arg0: i32, %arg1: i32, %arg2: i32) -> (i32, i32) {
    %c0_i32 = arith.constant 0 : i32
    return %arg0, %arg2 : i32, i32
  }
  func.func @transform_3(%arg0: i32, %arg1: i32, %arg2: i32) -> (i32, i32) {
    %c0_i32 = arith.constant 0 : i32
    return %arg0, %arg2 : i32, i32
  }
  func.func @transform_4(%arg0: i32, %arg1: i32, %arg2: i32) -> (i32, i32) {
    %c0_i32 = arith.constant 0 : i32
    %c0_i32_0 = arith.constant 0 : i32
    return %c0_i32, %arg0 : i32, i32
  }
  func.func @transform_5(%arg0: i32, %arg1: i32, %arg2: i32) -> (i32, i32) {
    %c0_i32 = arith.constant 0 : i32
    %c0_i32_0 = arith.constant 0 : i32
    return %c0_i32, %arg0 : i32, i32
  }
  func.func @transform_6(%arg0: i32, %arg1: i32, %arg2: i32) -> (i32, i32) {
    %c0_i32 = arith.constant 0 : i32
    %c0_i32_0 = arith.constant 0 : i32
    return %c0_i32, %arg0 : i32, i32
  }
  func.func @transform_7(%arg0: i32, %arg1: i32, %arg2: i32) -> (i32, i32) {
    %c0_i32 = arith.constant 0 : i32
    return %arg1, %arg0 : i32, i32
  }
  func.func @transform_8(%arg0: i32, %arg1: i32, %arg2: i32) -> (i32, i32) {
    %c0_i32 = arith.constant 0 : i32
    %c0_i32_0 = arith.constant 0 : i32
    return %arg0, %c0_i32 : i32, i32
  }
  func.func @transform_9(%arg0: i32, %arg1: i32, %arg2: i32) -> (i32, i32) {
    %c0_i32 = arith.constant 0 : i32
    %c0_i32_0 = arith.constant 0 : i32
    return %arg0, %c0_i32 : i32, i32
  }
}

</mosaic_0001>

<bundles_post_ra>
// kernel: bayesian_linear_forward.1
= control target key start
LH: loop header
LB: loop body
LE: loop exit
PB: predicated region body
PF: predicated region fallthrough
CT: control target
= control target key end

     0   :  { %15 = vsyncpa [#allocation4], 0  ;;  %s1728_s0 = inlined_call_operand.vmem [shape: f32[8,128], index: 0, kind: input, shape index: {}]   ;;  %s1729_s1 = inlined_call_operand.hbm [shape: f32[128,128], index: 1, kind: input, shape index: {}]   ;;  %s1730_s2 = inlined_call_operand.hbm [shape: f32[128,128], index: 2, kind: input, shape index: {}]   ;;  %s1731_s3 = inlined_call_operand.hbm [shape: bf16[128,128], index: 3, kind: input, shape index: {}]   ;;  %s1732_s4 = inlined_call_operand.vmem [shape: f32[1,128], index: 4, kind: input, shape index: {}]   ;;  %s1733_s5 = inlined_call_operand.vmem [shape: f32[1,128], index: 5, kind: input, shape index: {}]   ;;  %s1734_s6 = inlined_call_operand.vmem [shape: bf16[1,128], index: 6, kind: input, shape index: {}]   ;;  %s1735_s7 = inlined_call_operand.hbm [shape: f32[8,128], index: 7, kind: output, shape index: {0}]   ;;  %s1736_s8 = inlined_call_operand.hbm [shape: f32[1,1], index: 8, kind: output, shape index: {1}]   ;;  %s1737_s9 = inlined_call_operand.hbm [shape: f32[1,1], index: 9, kind: output, shape index: {2}]  }
   0x1   :  { %16 = vsyncpa [#allocation8], 0 }
   0x2   :  { %17 = vsyncpa [#allocation5], 0 }
   0x3   :  { %18 = vsyncpa [#allocation6], 0 }
   0x4   :  { %19 = vsyncpa [#allocation13], 0  ;;  %s39_s11 = sshll.u32 %s1730_s2, 4  ;;  %s1368_s12 = smov [#allocation7]   ;;  %s40_s11 = int_to_ptr.hbm [resolvable:$true] %s39_s11 }
   0x5   :  { %s41_s13 = sshll.u32 %s1368_s12, 4  ;;  %s26_s16 = sshll.u32 %s1729_s1, 4  ;;  %s42_s13 = int_to_ptr.vmem [resolvable:$true] %s41_s13  ;;  %s27_s16 = int_to_ptr.hbm [resolvable:$true] %s26_s16 }
   0x6   :  { %s1369_s17 = smov 128   ;;  %s1370_s18 = smov 8  }
   0x7   :  { %47 = dma.hbm_to_vmem [thread:$0]  %s40_s11, 2048, %s42_s13, [#allocation8], %s1369_s17, %s1369_s17, %s1370_s18  }
   0x8   :  { %s1371_s19 = smov [#allocation3]   ;;  %s52_s23 = sshll.u32 %s1731_s3, 4  ;;  %s53_s23 = int_to_ptr.hbm [resolvable:$true] %s52_s23 }
   0x9   :  { %s28_s20 = sshll.u32 %s1371_s19, 4  ;;  %s1372_s2 = smov [#allocation9]   ;;  %s29_s20 = int_to_ptr.vmem [resolvable:$true] %s28_s20 }
   0xa   :  { %34 = dma.hbm_to_vmem [thread:$0]  %s27_s16, 2048, %s29_s20, [#allocation4], %s1369_s17, %s1369_s17, %s1370_s18  }
   0xb   :  { %s54_s24 = sshll.u32 %s1372_s2, 4  ;;  %s1373_s25 = smov 64   ;;  %s55_s24 = int_to_ptr.vmem [resolvable:$true] %s54_s24 }
   0xc   :  { %s1374_s26 = smov 4  }
   0xd   :  { %60 = dma.hbm_to_vmem [thread:$0]  %s53_s23, 1024, %s55_s24, [#allocation8], %s1373_s25, %s1373_s25, %s1374_s26  }
   0xe   :  { %1358 = dma.done.wait [#allocation4], 2048  }
   0xf   :  { %1359 = vsyncadd [#allocation4], 4294965248 }
  0x10   :  { %1360 = dma.done.wait [#allocation8], 3072  }
  0x11   :  { %1361 = vsyncadd [#allocation8], 4294964224  ;;  %v1437_v0 = vld [vmem:[#allocation7] sm:$0xff]  ;;  %v1439_v1 = vld [vmem:[#allocation7 + $0x8] sm:$0xff]  ;;  %vm1015_vm8 = vcmask 1040384   ;;  %s1375_s16 = smov [#allocation10]  }
  0x12   :  { %v127_v2 = vand.u32 2147483647, %v1437_v0  ;;  %v128_v3 = vand.u32 2147483647, %v1439_v1  ;;  %v1443_v4 = vld [vmem:[#allocation7 + $0x78] sm:$0xff]  ;;  %v1452_v11 = vld [vmem:[#allocation7 + $0x70] sm:$0xff] }
  0x13   :  { %v1448_v6 = vld [vmem:[%s1733_s5] sm:$0x1]  ;;  %v142_v10 = vand.u32 2147483647, %v1443_v4  ;;  %v141_v14 = vand.u32 2147483647, %v1452_v11 }
  0x14   :  { %v143_v5 = vsub.f32 0.0, %v127_v2  ;;  %v144_v7 = vsub.f32 0.0, %v128_v3  ;;  %v972_v8 = vand.u32 2147483647, %v1448_v6  ;;  %v1455_v19 = vld [vmem:[#allocation7 + $0x68] sm:$0xff]  ;;  %v1091_v23 = vld [vmem:[#allocation9] sm:$0xff]  }
  0x15   :  { %v158_v15 = vsub.f32 0.0, %v142_v10  ;;  %v157_v17 = vsub.f32 0.0, %v141_v14  ;;  %v140_v21 = vand.u32 2147483647, %v1455_v19  ;;  %v1458_v24 = vld [vmem:[#allocation7 + $0x60] sm:$0xff]  ;;  %v111_v28 = vmax.f32 %v1437_v0, 0.0 }
  0x16   :  { %v159_v9 = vmul.f32 1.442695, %v143_v5  ;;  %v161_v12 = vmul.f32 1.442695, %v144_v7  ;;  %v973_v13 = vsub.f32 0.0, %v972_v8  ;;  %v112_v29 = vmax.f32 %v1439_v1, 0.0 }
  0x17   :  { %v189_v18 = vmul.f32 1.442695, %v158_v15  ;;  %v187_v20 = vmul.f32 1.442695, %v157_v17  ;;  %v1462_v33 = vunpack.c.l.bf16 %v1091_v23  ;;  %v156_v34 = vsub.f32 0.0, %v140_v21  ;;  %v1476_v56 = vld [vmem:[#allocation7 + $0x58] sm:$0xff] }
  0x18   :  { %1148 = vpow2.f32 %v159_v9  ;;  %v974_v16 = vmul.f32 1.442695, %v973_v13  ;;  %v139_v35 = vand.u32 2147483647, %v1458_v24  ;;  %v986_v40 = vld [vmem:[%s1734_s6] sm:$0x1]  ;;  %v1470_v46 = vunpack.c.h.bf16 %v1091_v23 }
  0x19   :  { %1150 = vpow2.f32 %v161_v12  ;;  %v971_v53 = vmax.f32 %v1448_v6, 0.0  ;;  %v1474_v54 = vunpack.c.l.bf16 %v986_v40  ;;  %v185_v55 = vmul.f32 1.442695, %v156_v34  ;;  %v1500_v17 = vld [vmem:[#allocation9 + $0x38] sm:$0xff]   ;;  %v80_v23 = vld [vmem:[#allocation3 + $0x8] sm:$0xff]  ;;  %s1048_s17 = sshll.u32 %s1375_s16, 4  ;;  %s1049_s17 = int_to_ptr.vmem [resolvable:$true] %s1048_s17 }
  0x1a   :  { %1152 = vpow2.f32 %v974_v16  ;;  %v155_v51 = vsub.f32 0.0, %v139_v35  ;;  %v138_v6 = vand.u32 2147483647, %v1476_v56  ;;  %v126_v9 = vmax.f32 %v1443_v4, 0.0  ;;  %v969_v34 = vld [vmem:[%s1732_s4] sm:$0x1] }
  0x1b   :  { %1154 = vpow2.f32 %v189_v18  ;;  %v79_v18 = vld [vmem:[#allocation3] sm:$0xff]  ;;  %v782_v21 = vlaneseq  ;;  %s1050_s20 = sshll.u32 %s1735_s7, 4  ;;  %s1059_s23 = sshll.u32 %s1736_s8, 4  ;;  %s1051_s20 = int_to_ptr.hbm [resolvable:$true] %s1050_s20  ;;  %s1060_s23 = int_to_ptr.hbm [resolvable:$true] %s1059_s23 }
  0x1c   :  { %1156 = vpow2.f32 %v187_v20  ;;  %v183_v5 = vmul.f32 1.442695, %v155_v51  ;;  %v695_v51 = vmul.f32 %v1470_v46, %v1470_v46  ;;  %s1068_s25 = sshll.u32 %s1737_s9, 4  ;;  %s1376_s7 = smov [#allocation11]   ;;  %s1069_s25 = int_to_ptr.hbm [resolvable:$true] %s1068_s25 }
  0x1d   :  { %s1377_s8 = smov [#allocation12]  }
  0x1e   :  { %v1149_v22 = vpop.eup %1148 }
  0x1f   :  { %v1151_v25 = vpop.eup %1150  ;;  %v191_v26 = vadd.f32 1.0, %v1149_v22  ;;  %v194_v27 = vmul.f32 -0.5, %v1149_v22  ;;  %v197_v38 = vand.u32 2147483647, %v1149_v22 }
  0x20   :  { %v200_v30 = vadd.f32 1.0, %v1151_v25  ;;  %v203_v31 = vmul.f32 -0.5, %v1151_v25  ;;  %v1153_v32 = vpop.eup %1152  ;;  %v206_v43 = vand.u32 2147483647, %v1151_v25 }
  0x21   :  { %1158 = vlog2.f32 %v191_v26  ;;  %v1155_v36 = vpop.eup %1154  ;;  %v195_v37 = vadd.f32 1.0, %v194_v27  ;;  %v976_v39 = vadd.f32 1.0, %v1153_v32  ;;  %v979_v44 = vmul.f32 -0.5, %v1153_v32 }
  0x22   :  { %1160 = vlog2.f32 %v200_v30  ;;  %v1468_v41 = vpop.eup %1156  ;;  %v204_v42 = vadd.f32 1.0, %v203_v31  ;;  %v326_v45 = vadd.f32 1.0, %v1155_v36  ;;  %v982_v47 = vand.u32 2147483647, %v1153_v32 }
  0x23   :  { %1162 = vlog2.f32 %v976_v39  ;;  %v317_v48 = vadd.f32 1.0, %v1468_v41  ;;  %v980_v49 = vadd.f32 1.0, %v979_v44  ;;  %v329_v50 = vmul.f32 -0.5, %v1155_v36  ;;  %v94_v39 = vld [vmem:[#allocation3 + $0x78] sm:$0xff] }
  0x24   :  { %1164 = vlog2.f32 %v326_v45  ;;  %v196_v52 = vmul.f32 %v1149_v22, %v195_v37  ;;  %vm1478_vm0 = vcmp.lt.f32.partialorder %v197_v38, 0.0004427343  ;;  %v205_v59 = vmul.f32 %v1151_v25, %v204_v42 }
  0x25   :  { %vm1482_vm1 = vcmp.lt.f32.partialorder %v206_v43, 0.0004427343  ;;  %v330_v61 = vadd.f32 1.0, %v329_v50  ;;  %vm1486_vm2 = vcmp.lt.f32.partialorder %v982_v47, 0.0004427343  ;;  %1166 = vlog2.f32 %v317_v48 }
  0x26   :  { %v332_v1 = vand.u32 2147483647, %v1155_v36  ;;  %v981_v3 = vmul.f32 %v1153_v32, %v980_v49  ;;  %1168 = vpow2.f32 %v185_v55  ;;  %v320_v4 = vmul.f32 -0.5, %v1468_v41 }
  0x27   :  { %v1159_v57 = vpop.eup %1158  ;;  %v331_v10 = vmul.f32 %v1155_v36, %v330_v61  ;;  %v1121_v27 = vunpack.c.h.bf16 %v1500_v17  ;;  %v154_v42 = vsub.f32 0.0, %v138_v6  ;;  %v1522_v44 = vand.u32 127, %v782_v21  ;;  %v1536_v6 = vld [vmem:[#allocation7 + $0x50] sm:$0xff] }
  0x28   :  { %v1161_v62 = vpop.eup %1160  ;;  %v193_v63 = vmul.f32 0.6931472, %v1159_v57  ;;  %vm1496_vm3 = vcmp.lt.f32.partialorder %v332_v1, 0.0004427343  ;;  %v321_v40 = vadd.f32 1.0, %v320_v4  ;;  %v125_v47 = vmax.f32 %v1452_v11, 0.0 }
  0x29   :  { %v202_v2 = vmul.f32 0.6931472, %v1161_v62  ;;  %v1163_v7 = vpop.eup %1162  ;;  %v694_v50 = vmul.f32 %v1462_v33, %v1462_v33  ;;  %v323_v58 = vand.u32 2147483647, %v1468_v41  ;;  %v181_v16 = vmul.f32 1.442695, %v154_v42 }
  0x2a   :  { %v199_v8 = vsel %vm1478_vm0, %v196_v52, %v193_v63  ;;  %v1165_v12 = vpop.eup %1164  ;;  %v978_v15 = vmul.f32 0.6931472, %v1163_v7  ;;  %v322_v62 = vmul.f32 %v1468_v41, %v321_v40  ;;  %vm803_vm5 = vcmp.lt.s32.totalorder %v1522_v44, 32 }
  0x2b   :  { %v208_v13 = vsel %vm1482_vm1, %v205_v59, %v202_v2  ;;  %v335_v14 = vadd.f32 %v199_v8, %v111_v28  ;;  %v328_v22 = vmul.f32 0.6931472, %v1165_v12  ;;  %v1167_v28 = vpop.eup %1166  ;;  %v710_v1 = vmul.f32 0.5, %v694_v50 }
  0x2c   :  { %v336_v20 = vadd.f32 %v208_v13, %v112_v29  ;;  %v984_v26 = vsel %vm1486_vm2, %v981_v3, %v978_v15  ;;  %v1515_v36 = vpop.eup %1168  ;;  %v319_v57 = vmul.f32 0.6931472, %v1167_v28  ;;  %vm324_vm4 = vcmp.lt.f32.partialorder %v323_v58, 0.0004427343  ;;  %v93_v13 = vld [vmem:[#allocation3 + $0x70] sm:$0xff] }
  0x2d   :  { %v383_v25 = vmul.f32 %v1462_v33, %v335_v14  ;;  %1170 = vlog2.f32 %v335_v14  ;;  %v985_v31 = vadd.f32 %v984_v26, %v971_v53  ;;  %v334_v29 = vsel %vm1496_vm3, %v331_v10, %v328_v22 }
  0x2e   :  { %v384_v30 = vmul.f32 %v1470_v46, %v336_v20  ;;  %1172 = vlog2.f32 %v336_v20  ;;  %v350_v35 = vadd.f32 %v334_v29, %v126_v9  ;;  %v1120_v46 = vunpack.c.l.bf16 %v1500_v17 }
  0x2f   :  { %v1510_v32 = vadd.f32 %v383_v25, %v79_v18  ;;  %1174 = vpow2.f32 %v183_v5  ;;  %v988_v38 = vmul.f32 %v1474_v54, %v985_v31  ;;  %v711_v5 = vmul.f32 0.5, %v695_v51 }
  0x30   :  { %v1517_v37 = vadd.f32 %v384_v30, %v80_v23  ;;  %v398_v45 = vmul.f32 %v1121_v27, %v350_v35  ;;  %1176 = vlog2.f32 %v985_v31  ;;  %v325_v9 = vsel %vm324_vm4, %v322_v62, %v319_v57 }
  0x31   :  { %v486_v43 = vmul.f32 %v1510_v32, %v1510_v32  ;;  %v989_v49 = vadd.f32 %v988_v38, %v969_v34  ;;  %v349_v10 = vadd.f32 %v325_v9, %v125_v47  ;;  %v137_v12 = vand.u32 2147483647, %v1536_v6 }
  0x32   :  { %v487_v48 = vmul.f32 %v1517_v37, %v1517_v37  ;;  %v414_v55 = vadd.f32 %v398_v45, %v94_v39  ;;  %v308_v14 = vadd.f32 1.0, %v1515_v36  ;;  %v311_v15 = vmul.f32 -0.5, %v1515_v36 }
  0x33   :  { %v1171_v52 = vpop.eup %1170  ;;  %v518_v53 = vmul.f32 -0.43233237, %v486_v43  ;;  %v996_v61 = vmul.f32 %v989_v49, %v989_v49  ;;  %v397_v20 = vmul.f32 %v1120_v46, %v349_v10  ;;  %v1542_v22 = vmul.f32 -0.06766764, %v486_v43  ;;  %v1559_v49 = vld [vmem:[#allocation9 + $0x30] sm:$0xff]  }
  0x34   :  { %v1173_v59 = vpop.eup %1172  ;;  %v519_v60 = vmul.f32 -0.43233237, %v487_v48  ;;  %v647_v11 = vmul.f32 0.6931472, %v1171_v52  ;;  %422 = vmatpush.xpose.msra.mxu0 %v414_v55  ;;  %v1544_v4 = vmul.f32 -0.06766764, %v487_v48  ;;  %v993_v23 = vmul.f32 %v1474_v54, %v1474_v54 }
  0x35   :  { %v1533_v63 = vpop.eup %1174  ;;  %v534_v0 = vmul.f32 1.442695, %v518_v53  ;;  %v649_v33 = vmul.f32 0.6931472, %v1173_v59  ;;  %v998_v3 = vmul.f32 -0.43233237, %v996_v61  ;;  %v413_v27 = vadd.f32 %v397_v20, %v93_v13 }
  0x36   :  { %v536_v2 = vmul.f32 1.442695, %v519_v60  ;;  %v678_v7 = vsub.f32 -0.9189385, %v647_v11  ;;  %v1177_v21 = vpop.eup %1176  ;;  %v1548_v26 = vmul.f32 -0.06766764, %v996_v61  ;;  %v1117_v11 = vunpack.c.h.bf16 %v1559_v49 }
  0x37   :  { %1178 = vpow2.f32 %v534_v0  ;;  %v679_v8 = vsub.f32 -0.9189385, %v649_v33  ;;  %v999_v41 = vmul.f32 1.442695, %v998_v3  ;;  %v991_v28 = vmul.f32 0.6931472, %v1177_v21 }
  0x38   :  { %1180 = vpow2.f32 %v536_v2  ;;  %v726_v17 = vsub.f32 %v678_v7, %v710_v1  ;;  %v312_v30 = vadd.f32 1.0, %v311_v15  ;;  %v314_v34 = vand.u32 2147483647, %v1515_v36  ;;  %423 = vmatpush.xpose.msra.mxu0 %v413_v27  ;;  %v1569_v59 = vld [vmem:[#allocation7 + $0x48] sm:$0xff]  ;;  %v1573_v33 = vld [vmem:[#allocation7 + $0x40] sm:$0xff] }
  0x39   :  { %1182 = vpow2.f32 %v999_v41  ;;  %v727_v18 = vsub.f32 %v679_v8, %v711_v5  ;;  %v299_v35 = vadd.f32 1.0, %v1533_v63  ;;  %v302_v38 = vmul.f32 -0.5, %v1533_v63  ;;  %v1578_v2 = vld [vmem:[#allocation9 + $0x28] sm:$0xff]  }
  0x3a   :  { %1184 = vlog2.f32 %v308_v14  ;;  %v865_v40 = vsel %vm803_vm5, %v726_v17, 0.0  ;;  %v124_v42 = vmax.f32 %v1455_v19, 0.0  ;;  %vm1011_vm6 = vcmp.lt.s32.totalorder %v1522_v44, 16  ;;  %v92_v7 = vld [vmem:[#allocation3 + $0x68] sm:$0xff] }
  0x3b   :  { %v866_v54 = vsel %vm803_vm5, %v727_v18, 0.0  ;;  %v992_v47 = vsub.f32 -0.9189385, %v991_v28  ;;  %v994_v48 = vmul.f32 0.5, %v993_v23  ;;  %1186 = vlog2.f32 %v299_v35  ;;  %v1590_v18 = vld [vmem:[#allocation7 + $0x38] sm:$0xff]  ;;  %v1596_v35 = vld [vmem:[#allocation7 + $0x30] sm:$0xff] }
  0x3c   :  { %v313_v52 = vmul.f32 %v1515_v36, %v312_v30  ;;  %v303_v53 = vadd.f32 1.0, %v302_v38  ;;  %v1562_v57 = vadd.f32 %v866_v54, %v865_v40  ;;  %vm1564_vm7 = vcmp.lt.f32.partialorder %v314_v34, 0.0004427343  ;;  %v91_v40 = vld [vmem:[#allocation3 + $0x60] sm:$0xff] }
  0x3d   :  { %v1179_v25 = vpop.eup %1178  ;;  %v305_v58 = vand.u32 2147483647, %v1533_v63  ;;  %v995_v62 = vsub.f32 %v992_v47, %v994_v48  ;;  %v123_v36 = vmax.f32 %v1458_v24, 0.0  ;;  %v153_v0 = vsub.f32 0.0, %v137_v12  ;;  %v1615_v24 = vld [vmem:[#allocation7 + $0x28] sm:$0xff] }
  0x3e   :  { %v1181_v31 = vpop.eup %1180  ;;  %v566_v29 = vmul.f32 0.19947115, %v1179_v25  ;;  %v304_v46 = vmul.f32 %v1533_v63, %v303_v53  ;;  %v136_v3 = vand.u32 2147483647, %v1569_v59  ;;  %v1116_v41 = vunpack.c.l.bf16 %v1559_v49 }
  0x3f   :  { %v567_v39 = vmul.f32 0.19947115, %v1181_v31  ;;  %v1183_v43 = vpop.eup %1182  ;;  %vm1581_vm9 = vcmp.lt.f32.partialorder %v305_v58, 0.0004427343  ;;  %v179_v9 = vmul.f32 1.442695, %v153_v0 }
  0x40   :  { %v582_v45 = vadd.f32 0.073381335, %v566_v29  ;;  %v1001_v51 = vmul.f32 0.19947115, %v1183_v43  ;;  %v1185_v55 = vpop.eup %1184  ;;  %v122_v12 = vmax.f32 %v1476_v56, 0.0  ;;  %v152_v13 = vsub.f32 0.0, %v136_v3 }
  0x41   :  { %v583_v50 = vadd.f32 0.073381335, %v567_v39  ;;  %v310_v61 = vmul.f32 0.6931472, %v1185_v55  ;;  %v1187_v5 = vpop.eup %1186  ;;  %v135_v63 = vand.u32 2147483647, %v1573_v33 }
  0x42   :  { %1188 = vlog2.f32 %v582_v45  ;;  %v1002_v60 = vadd.f32 0.073381335, %v1001_v51  ;;  %v301_v10 = vmul.f32 0.6931472, %v1187_v5  ;;  %v121_v17 = vmax.f32 %v1536_v6, 0.0 }
  0x43   :  { %1190 = vlog2.f32 %v583_v50  ;;  %v316_v1 = vsel %vm1564_vm7, %v313_v52, %v310_v61  ;;  %v1013_v23 = vsel %vm1011_vm6, %v995_v62, 0.0  ;;  %v177_v27 = vmul.f32 1.442695, %v152_v13 }
  0x44   :  { %1192 = vpow2.f32 %v181_v16  ;;  %v348_v8 = vadd.f32 %v316_v1, %v124_v42  ;;  %v1113_v16 = vunpack.c.h.bf16 %v1578_v2  ;;  %v307_v25 = vsel %vm1581_vm9, %v304_v46, %v301_v10  ;;  %v1613_v46 = vld [vmem:[#allocation9 + $0x20] sm:$0xff]  }
  0x45   :  { %1194 = vlog2.f32 %v1002_v60  ;;  %v347_v29 = vadd.f32 %v307_v25, %v123_v36  ;;  %v151_v34 = vsub.f32 0.0, %v135_v63  ;;  %v134_v43 = vand.u32 2147483647, %v1590_v18 }
  0x46   :  { %v396_v15 = vmul.f32 %v1117_v11, %v348_v8  ;;  %1196 = vpow2.f32 %v179_v9  ;;  %v133_v51 = vand.u32 2147483647, %v1596_v35  ;;  %v1030_v62 = vsel %vm1015_vm8, %v1013_v23, 0.0 }
  0x47   :  { %v395_v48 = vmul.f32 %v1116_v41, %v347_v29  ;;  %1198 = vpow2.f32 %v177_v27  ;;  %v175_v19 = vmul.f32 1.442695, %v151_v34  ;;  %v150_v36 = vsub.f32 0.0, %v134_v43 }
  0x48   :  { %v1189_v14 = vpop.eup %1188  ;;  %v412_v31 = vadd.f32 %v396_v15, %v92_v7  ;;  %v120_v1 = vmax.f32 %v1569_v59, 0.0  ;;  %v149_v8 = vsub.f32 0.0, %v133_v51  ;;  %v1109_v15 = vunpack.c.h.bf16 %v1613_v46 }
  0x49   :  { %v1191_v20 = vpop.eup %1190  ;;  %v599_v21 = vmul.f32 0.6931472, %v1189_v14  ;;  %v411_v55 = vadd.f32 %v395_v48, %v91_v40  ;;  %v173_v7 = vmul.f32 1.442695, %v150_v36  ;;  %v119_v25 = vmax.f32 %v1573_v33, 0.0  ;;  %v1634_v48 = vld [vmem:[#allocation7 + $0x20] sm:$0xff] }
  0x4a   :  { %v1193_v28 = vpop.eup %1192  ;;  %v601_v30 = vmul.f32 0.6931472, %v1191_v20  ;;  %424 = vmatpush.xpose.msra.mxu0 %v412_v31  ;;  %v171_v20 = vmul.f32 1.442695, %v149_v8  ;;  %v132_v31 = vand.u32 2147483647, %v1615_v24  ;;  %v1108_v43 = vunpack.c.l.bf16 %v1613_v46 }
  0x4b   :  { %v1195_v38 = vpop.eup %1194  ;;  %v630_v39 = vadd.f32 %v599_v21, %v1542_v22  ;;  %v290_v54 = vadd.f32 1.0, %v1193_v28  ;;  %v293_v42 = vmul.f32 -0.5, %v1193_v28  ;;  %v296_v58 = vand.u32 2147483647, %v1193_v28  ;;  %v1648_v36 = vld [vmem:[#allocation9 + $0x18] sm:$0xff]  }
  0x4c   :  { %v631_v45 = vadd.f32 %v601_v30, %v1544_v4  ;;  %v1004_v47 = vmul.f32 0.6931472, %v1195_v38  ;;  %v1197_v52 = vpop.eup %1196  ;;  %v117_v59 = vmax.f32 %v1596_v35, 0.0 }
  0x4d   :  { %v821_v49 = vsel %vm803_vm5, %v630_v39, 0.0  ;;  %1200 = vlog2.f32 %v290_v54  ;;  %v294_v50 = vadd.f32 1.0, %v293_v42  ;;  %v281_v60 = vadd.f32 1.0, %v1197_v52  ;;  %v1199_v3 = vpop.eup %1198  ;;  %v90_v54 = vld [vmem:[#allocation3 + $0x58] sm:$0xff] }
  0x4e   :  { %v822_v22 = vsel %vm803_vm5, %v631_v45, 0.0  ;;  %v1005_v53 = vadd.f32 %v1004_v47, %v1548_v26  ;;  %v284_v61 = vmul.f32 -0.5, %v1197_v52  ;;  %425 = vmatpush.xpose.msra.mxu0 %v411_v55  ;;  %1202 = vpow2.f32 %v175_v19 }
  0x4f   :  { %v837_v4 = vadd.f32 %v822_v22, %v821_v49  ;;  %1204 = vlog2.f32 %v281_v60  ;;  %v1112_v26 = vunpack.c.l.bf16 %v1578_v2  ;;  %v295_v5 = vmul.f32 %v1193_v28, %v294_v50 }
  0x50   :  { %v1012_v11 = vsel %vm1011_vm6, %v1005_v53, 0.0  ;;  %v285_v44 = vadd.f32 1.0, %v284_v61  ;;  %vm1617_vm10 = vcmp.lt.f32.partialorder %v296_v58, 0.0004427343  ;;  %v287_v10 = vand.u32 2147483647, %v1197_v52 }
  0x51   :  { %852 = vadd.xlane.f32.xlu0 %v837_v4  ;;  %v1016_v0 = vsel %vm1015_vm8, %v1012_v11, 0.0  ;;  %v272_v13 = vadd.f32 1.0, %v1199_v3  ;;  %v275_v63 = vmul.f32 -0.5, %v1199_v3  ;;  %1206 = vpow2.f32 %v173_v7  ;;  %v89_v58 = vld [vmem:[#allocation3 + $0x50] sm:$0xff]  ;;  %v1652_v7 = vld [vmem:[#allocation7 + $0x18] sm:$0xff] }
  0x52   :  { %1017 = vadd.xlane.f32.xlu1 %v1016_v0  ;;  %v278_v23 = vand.u32 2147483647, %v1199_v3  ;;  %v286_v30 = vmul.f32 %v1197_v52, %v285_v44  ;;  %vm1628_vm11 = vcmp.lt.f32.partialorder %v287_v10, 0.0004427343  ;;  %v118_v45 = vmax.f32 %v1590_v18, 0.0  ;;  %v88_v10 = vld [vmem:[#allocation3 + $0x48] sm:$0xff] }
  0x53   :  { %v1201_v41 = vpop.eup %1200  ;;  %1208 = vlog2.f32 %v272_v13  ;;  %v276_v21 = vadd.f32 1.0, %v275_v63  ;;  %v148_v47 = vsub.f32 0.0, %v132_v31  ;;  %v1105_v63 = vunpack.c.h.bf16 %v1648_v36 }
  0x54   :  { %v292_v14 = vmul.f32 0.6931472, %v1201_v41  ;;  %v1203_v27 = vpop.eup %1202  ;;  %1210 = vpow2.f32 %v171_v20  ;;  %vm1639_vm12 = vcmp.lt.f32.partialorder %v278_v23, 0.0004427343 }
  0x55   :  { %v1205_v29 = vpop.eup %1204  ;;  %v263_v39 = vadd.f32 1.0, %v1203_v27  ;;  %v266_v40 = vmul.f32 -0.5, %v1203_v27  ;;  %v269_v22 = vand.u32 2147483647, %v1203_v27  ;;  %v169_v53 = vmul.f32 1.442695, %v148_v47 }
  0x56   :  { %v298_v28 = vsel %vm1617_vm10, %v295_v5, %v292_v14  ;;  %v283_v42 = vmul.f32 0.6931472, %v1205_v29 }
  0x57   :  { %v346_v34 = vadd.f32 %v298_v28, %v122_v12  ;;  %v277_v12 = vmul.f32 %v1199_v3, %v276_v21  ;;  %1212 = vlog2.f32 %v263_v39  ;;  %v1207_v50 = vpop.eup %1206  ;;  %v267_v52 = vadd.f32 1.0, %v266_v40 }
  0x58   :  { %v289_v51 = vsel %vm1628_vm11, %v286_v30, %v283_v42  ;;  %v254_v2 = vadd.f32 1.0, %v1207_v50  ;;  %v257_v61 = vmul.f32 -0.5, %v1207_v50  ;;  %v260_v11 = vand.u32 2147483647, %v1207_v50 }
  0x59   :  { %896 = vadd.xlane.f32.xlu0 %v1562_v57  ;;  %v394_v56 = vmul.f32 %v1113_v16, %v346_v34  ;;  %v1209_v55 = vpop.eup %1208  ;;  %v345_v57 = vadd.f32 %v289_v51, %v121_v17  ;;  %v131_v16 = vand.u32 2147483647, %v1634_v48  ;;  %1214 = vpow2.f32 %v169_v53  ;;  %v1675_v34 = vld [vmem:[#allocation7 + $0x10] sm:$0xff] }
  0x5a   :  { %1031 = vadd.xlane.f32.xlu1 %v1030_v62  ;;  %v1211_v4 = vpop.eup %1210  ;;  %v274_v60 = vmul.f32 0.6931472, %v1209_v55  ;;  %1216 = vlog2.f32 %v254_v2  ;;  %v268_v17 = vmul.f32 %v1203_v27, %v267_v52  ;;  %v258_v5 = vadd.f32 1.0, %v257_v61  ;;  %v86_v2 = vld [vmem:[#allocation3 + $0x38] sm:$0xff] }
  0x5b   :  { %v410_v19 = vadd.f32 %v394_v56, %v90_v54  ;;  %v393_v62 = vmul.f32 %v1112_v26, %v345_v57  ;;  %v245_v0 = vadd.f32 1.0, %v1211_v4  ;;  %v248_v3 = vmul.f32 -0.5, %v1211_v4  ;;  %v87_v54 = vld [vmem:[#allocation3 + $0x40] sm:$0xff] }
  0x5c   :  { %v280_v6 = vsel %vm1639_vm12, %v277_v12, %v274_v60  ;;  %v251_v44 = vand.u32 2147483647, %v1211_v4  ;;  %vm1656_vm13 = vcmp.lt.f32.partialorder %v269_v22, 0.0004427343  ;;  %v147_v20 = vsub.f32 0.0, %v131_v16  ;;  %v85_v60 = vld [vmem:[#allocation3 + $0x30] sm:$0xff] }
  0x5d   :  { %426 = vmatpush.xpose.msra.mxu0 %v410_v19  ;;  %v1213_v8 = vpop.eup %1212  ;;  %v409_v41 = vadd.f32 %v393_v62, %v89_v58  ;;  %v344_v9 = vadd.f32 %v280_v6, %v120_v1  ;;  %1218 = vlog2.f32 %v245_v0  ;;  %v249_v14 = vadd.f32 1.0, %v248_v3 }
  0x5e   :  { %v265_v13 = vmul.f32 0.6931472, %v1213_v8  ;;  %vm1663_vm14 = vcmp.lt.f32.partialorder %v260_v11, 0.0004427343  ;;  %v130_v1 = vand.u32 2147483647, %v1652_v7  ;;  %v259_v30 = vmul.f32 %v1207_v50, %v258_v5 }
  0x5f   :  { %v392_v21 = vmul.f32 %v1109_v15, %v344_v9  ;;  %v1215_v27 = vpop.eup %1214  ;;  %vm1671_vm15 = vcmp.lt.f32.partialorder %v251_v44, 0.0004427343  ;;  %v167_v29 = vmul.f32 1.442695, %v147_v20  ;;  %v250_v47 = vmul.f32 %v1211_v4, %v249_v14 }
  0x60   :  { %v271_v28 = vsel %vm1656_vm13, %v268_v17, %v265_v13  ;;  %v1217_v15 = vpop.eup %1216  ;;  %v236_v35 = vadd.f32 1.0, %v1215_v27  ;;  %v239_v40 = vmul.f32 -0.5, %v1215_v27  ;;  %v146_v56 = vsub.f32 0.0, %v130_v1 }
  0x61   :  { %427 = vmatpush.xpose.msra.mxu0 %v409_v41  ;;  %v408_v38 = vadd.f32 %v392_v21, %v88_v10  ;;  %v343_v39 = vadd.f32 %v271_v28, %v119_v25  ;;  %v256_v42 = vmul.f32 0.6931472, %v1217_v15  ;;  %1220 = vpow2.f32 %v167_v29 }
  0x62   :  { %1222 = vlog2.f32 %v236_v35  ;;  %v242_v50 = vand.u32 2147483647, %v1215_v27  ;;  %v129_v51 = vand.u32 2147483647, %v1675_v34  ;;  %v240_v52 = vadd.f32 1.0, %v239_v40 }
  0x63   :  { %v1219_v12 = vpop.eup %1218  ;;  %v391_v49 = vmul.f32 %v1108_v43, %v343_v39  ;;  %v262_v33 = vsel %vm1663_vm14, %v259_v30, %v256_v42  ;;  %v165_v22 = vmul.f32 1.442695, %v146_v56  ;;  %v1104_v19 = vunpack.c.l.bf16 %v1648_v36 }
  0x64   :  { %v247_v25 = vmul.f32 0.6931472, %v1219_v12  ;;  %v342_v55 = vadd.f32 %v262_v33, %v118_v45  ;;  %v145_v57 = vsub.f32 0.0, %v129_v51  ;;  %v116_v61 = vmax.f32 %v1615_v24, 0.0  ;;  %v1123_v45 = vld [vmem:[#allocation9 + $0x10] sm:$0xff]   ;;  %v83_v12 = vld [vmem:[#allocation3 + $0x20] sm:$0xff] }
  0x65   :  { %428 = vmatpush.xpose.msra.mxu0 %v408_v38  ;;  %v407_v53 = vadd.f32 %v391_v49, %v87_v54  ;;  %1224 = vpow2.f32 %v165_v22  ;;  %v241_v11 = vmul.f32 %v1215_v27, %v240_v52  ;;  %vm1690_vm0 = vcmp.lt.f32.partialorder %v242_v50, 0.0004427343 }
  0x66   :  { %v253_v46 = vsel %vm1671_vm15, %v250_v47, %v247_v25  ;;  %v390_v43 = vmul.f32 %v1105_v63, %v342_v55  ;;  %v163_v4 = vmul.f32 1.442695, %v145_v57  ;;  %v1101_v44 = vunpack.c.h.bf16 %v1123_v45  ;;  %v84_v63 = vld [vmem:[#allocation3 + $0x28] sm:$0xff] }
  0x67   :  { %v341_v16 = vadd.f32 %v253_v46, %v117_v59  ;;  %v1221_v58 = vpop.eup %1220  ;;  %v115_v21 = vmax.f32 %v1634_v48, 0.0  ;;  %v1100_v38 = vunpack.c.l.bf16 %v1123_v45  ;;  %v1122_v48 = vld [vmem:[#allocation9 + $0x8] sm:$0xff]   ;;  %v114_v47 = vmax.f32 %v1652_v7, 0.0 }
  0x68   :  { %v1223_v62 = vpop.eup %1222  ;;  %v406_v36 = vadd.f32 %v390_v43, %v86_v2  ;;  %v227_v3 = vadd.f32 1.0, %v1221_v58  ;;  %v230_v6 = vmul.f32 -0.5, %v1221_v58  ;;  %1226 = vpow2.f32 %v163_v4  ;;  %v81_v4 = vld [vmem:[#allocation3 + $0x10] sm:$0xff] }
  0x69   :  { %429 = vmatpush.xpose.msra.mxu0 %v407_v53  ;;  %v389_v0 = vmul.f32 %v1104_v19, %v341_v16  ;;  %v238_v17 = vmul.f32 0.6931472, %v1223_v62  ;;  %v233_v9 = vand.u32 2147483647, %v1221_v58  ;;  %v1097_v51 = vunpack.c.h.bf16 %v1122_v48  ;;  %v82_v19 = vld [vmem:[#allocation3 + $0x18] sm:$0xff] }
  0x6a   :  { %1228 = vlog2.f32 %v227_v3  ;;  %v231_v41 = vadd.f32 1.0, %v230_v6  ;;  %v113_v55 = vmax.f32 %v1675_v34, 0.0  ;;  %v1096_v46 = vunpack.c.l.bf16 %v1122_v48  ;;  %v420_v34 = vld [vmem:[%s1728_s0] sm:$0xff] }
  0x6b   :  { %v405_v5 = vadd.f32 %v389_v0, %v85_v60  ;;  %v1225_v8 = vpop.eup %1224  ;;  %v244_v24 = vsel %vm1690_vm0, %v241_v11, %v238_v17  ;;  %vm1697_vm1 = vcmp.lt.f32.partialorder %v233_v9, 0.0004427343 }
  0x6c   :  { %v340_v26 = vadd.f32 %v244_v24, %v116_v61  ;;  %v218_v10 = vadd.f32 1.0, %v1225_v8  ;;  %v221_v13 = vmul.f32 -0.5, %v1225_v8  ;;  %v232_v23 = vmul.f32 %v1221_v58, %v231_v41 }
  0x6d   :  { %430 = vmatpush.xpose.msra.mxu0 %v406_v36  ;;  %v224_v30 = vand.u32 2147483647, %v1225_v8 }
  0x6e   :  { %v388_v14 = vmul.f32 %v1101_v44, %v340_v26  ;;  %1230 = vlog2.f32 %v218_v10  ;;  %v1227_v20 = vpop.eup %1226  ;;  %v222_v1 = vadd.f32 1.0, %v221_v13  ;;  %v448_v13 = vld [vmem:[%s1733_s5] sm:$0x1] }
  0x6f   :  { %v209_v31 = vadd.f32 1.0, %v1227_v20  ;;  %v212_v29 = vmul.f32 -0.5, %v1227_v20  ;;  %vm225_vm2 = vcmp.lt.f32.partialorder %v224_v30, 0.0004427343  ;;  %v215_v56 = vand.u32 2147483647, %v1227_v20 }
  0x70   :  { %v1229_v27 = vpop.eup %1228  ;;  %v404_v28 = vadd.f32 %v388_v14, %v84_v63  ;;  %v223_v35 = vmul.f32 %v1225_v8, %v222_v1 }
  0x71   :  { %431 = vmatpush.xpose.msra.mxu0 %v405_v5  ;;  %v229_v15 = vmul.f32 0.6931472, %v1229_v27  ;;  %1232 = vlog2.f32 %v209_v31  ;;  %v213_v40 = vadd.f32 1.0, %v212_v29  ;;  %vm216_vm3 = vcmp.lt.f32.partialorder %v215_v56, 0.0004427343 }
  0x72   :  { %v464_v56 = vld [vmem:[%s1734_s6] sm:$0x1] }
  0x73   :  { %v235_v39 = vsel %vm1697_vm1, %v232_v23, %v229_v15  ;;  %v214_v25 = vmul.f32 %v1227_v20, %v213_v40  ;;  %v450_v23 = vand.u32 2147483647, %v448_v13 }
  0x74   :  { %v1231_v54 = vpop.eup %1230  ;;  %v339_v42 = vadd.f32 %v235_v39, %v115_v21 }
  0x75   :  { %432 = vmatpush.xpose.msra.mxu0 %v404_v28  ;;  %v220_v49 = vmul.f32 0.6931472, %v1231_v54  ;;  %v451_v30 = vsub.f32 0.0, %v450_v23 }
  0x76   :  { %v387_v50 = vmul.f32 %v1100_v38, %v339_v42  ;;  %v449_v42 = vmax.f32 %v448_v13, 0.0 }
  0x77   :  { %v226_v33 = vsel %vm225_vm2, %v223_v35, %v220_v49  ;;  %v1233_v52 = vpop.eup %1232  ;;  %v452_v31 = vmul.f32 1.442695, %v451_v30  ;;  %v465_v49 = vunpack.c.l.bf16 %v464_v56 }
  0x78   :  { %v403_v22 = vadd.f32 %v387_v50, %v83_v12  ;;  %v338_v53 = vadd.f32 %v226_v33, %v114_v47  ;;  %v211_v57 = vmul.f32 0.6931472, %v1233_v52 }
  0x79   :  { %1234 = vpow2.f32 %v452_v31 }
  0x7a   :  { %433 = vmatpush.xpose.msra.mxu0 %v403_v22  ;;  %v386_v2 = vmul.f32 %v1097_v51, %v338_v53  ;;  %v217_v7 = vsel %vm216_vm3, %v214_v25, %v211_v57  ;;  %v447_v51 = vld [vmem:[%s1732_s4] sm:$0x1] }
  0x7b   :  { %v337_v16 = vadd.f32 %v217_v7, %v113_v55 }
  0x7c   :  { %v402_v43 = vadd.f32 %v386_v2, %v82_v19 }
  0x7d   :  { %v385_v58 = vmul.f32 %v1096_v46, %v337_v16 }
  0x7e   :  { %434 = vmatpush.xpose.msra.mxu0 %v402_v43 }
  0x7f   :  { %v401_v60 = vadd.f32 %v385_v58, %v81_v4  ;;  %v1235_v29 = vpop.eup %1234 }
  0x80   :  { %v454_v15 = vadd.f32 1.0, %v1235_v29  ;;  %v457_v38 = vmul.f32 -0.5, %v1235_v29  ;;  %v460_v48 = vand.u32 2147483647, %v1235_v29 }
  0x82   :  { %435 = vmatpush.xpose.msra.mxu0 %v401_v60  ;;  %1236 = vlog2.f32 %v454_v15  ;;  %v458_v39 = vadd.f32 1.0, %v457_v38  ;;  %vm461_vm4 = vcmp.lt.f32.partialorder %v460_v48, 0.0004427343 }
  0x84   :  { %v459_v54 = vmul.f32 %v1235_v29, %v458_v39 }
  0x86   :  { %436 = vmatpush.xpose.msra.mxu0 %v1517_v37 }
  0x88   :  { %v1237_v35 = vpop.eup %1236 }
  0x89   :  { %v456_v40 = vmul.f32 0.6931472, %v1237_v35 }
  0x8a   :  { %437 = vmatpush.xpose.msra.mxu0 %v1510_v32 }
  0x8b   :  { %v462_v47 = vsel %vm461_vm4, %v459_v54, %v456_v40 }
  0x8c   :  { %v463_v12 = vadd.f32 %v462_v47, %v449_v42 }
  0x8d   :  { %438 = vmatmul.f32.vlgmr.msra.gmra.mxu0 %v420_v34 }
  0x8e   :  { %v466_v50 = vmul.f32 %v465_v49, %v463_v12 }
  0x90   :  { %v467_v33 = vadd.f32 %v466_v50, %v447_v51 }
  0x92   :  { %v470_v25 = vperm.slane %v467_v33, 0 }
  0xc4   :  { %v853_v61 = vpop.xlane.xlu0 %852 }
  0xc5   :  { %v854_v11 = vrot.slane %v853_v61, 4  ;;  %v1018_v18 = vpop.xlane.xlu1 %1017 }
  0xc6   :  { %v1019_v45 = vrot.slane %v1018_v18, 4 }
  0xc7   :  { %v855_v62 = vadd.f32 %v854_v11, %v853_v61 }
  0xc8   :  { %v1020_v36 = vadd.f32 %v1019_v45, %v1018_v18 }
  0xc9   :  { %v856_v0 = vrot.slane %v855_v62, 2 }
  0xca   :  { %v1021_v6 = vrot.slane %v1020_v36, 2 }
  0xcb   :  { %v857_v3 = vadd.f32 %v856_v0, %v855_v62 }
  0xcc   :  { %v897_v17 = vpop.xlane.xlu0 %896  ;;  %v1022_v9 = vadd.f32 %v1021_v6, %v1020_v36 }
  0xcd   :  { %v898_v5 = vrot.slane %v897_v17, 4  ;;  %v1032_v44 = vpop.xlane.xlu1 %1031  ;;  %v858_v37 = vrot.slane %v857_v3, 1 }
  0xce   :  { %v1033_v8 = vrot.slane %v1032_v44, 4  ;;  %v1023_v20 = vrot.slane %v1022_v9, 1 }
  0xcf   :  { %v899_v32 = vadd.f32 %v898_v5, %v897_v17  ;;  %v859_v24 = vadd.f32 %v858_v37, %v857_v3 }
  0xd0   :  { %v1034_v41 = vadd.f32 %v1033_v8, %v1032_v44  ;;  %v1024_v27 = vadd.f32 %v1023_v20, %v1022_v9 }
  0xd1   :  { %v900_v26 = vrot.slane %v899_v32, 2  ;;  %1129 = vpush %v859_v24 }
  0xd2   :  { %v1035_v10 = vrot.slane %v1034_v41, 2 }
  0xd3   :  { %v901_v63 = vadd.f32 %v900_v26, %v899_v32 }
  0xd4   :  { %v1036_v14 = vadd.f32 %v1035_v10, %v1034_v41 }
  0xd5   :  { %v902_v21 = vrot.slane %v901_v63, 1 }
  0xd6   :  { %v1037_v59 = vrot.slane %v1036_v14, 1 }
  0xd7   :  { %v903_v1 = vadd.f32 %v902_v21, %v901_v63 }
  0xd8   :  { %v1038_v28 = vadd.f32 %v1037_v59, %v1036_v14 }
  0xd9   :  { %1131 = vpush %v903_v1 }
  0xda   :  { %1133 = vpush %v1024_v27 }
  0xdb   :  { %1135 = vpush %v1038_v28 }
 0x102   :  { %s1130_s2 = spop %1129 }
 0x10a   :  { %s1132_s4 = spop %1131  ;;  %v439_v52 = vpop.f32.mrf.mxu0 }
 0x10b   :  { %s1134_s26 = spop %1133  ;;  %v472_v22 = vadd.f32 %v470_v25, %v439_v52 }
 0x10c   :  { %s1026_s1 = sadd.f32 %s1134_s26, %s1130_s2  ;;  %s1136_s3 = spop %1135 }
 0x10d   :  { %s1040_s27 = sadd.f32 %s1136_s3, %s1132_s4  ;;  %473 = vst [vmem:[#allocation10] sm:$0xff] %v472_v22 }
 0x10e   :  { %1028 = sst [smem:[#allocation11]] %s1026_s1 }
 0x10f   :  { %1062 = dma.smem_to_hbm %s1376_s7, 16, %s1060_s23, [#allocation6]  }
 0x110   :  { %1042 = sst [smem:[#allocation12]] %s1040_s27 }
 0x111   :  { %1053 = dma.vmem_to_hbm [thread:$0]  %s1049_s17, 128, %s1051_s20, [#allocation5]  }
 0x112   :  { %1071 = dma.smem_to_hbm %s1377_s8, 16, %s1069_s25, [#allocation13]  }
 0x113   :  { %1362 = dma.done.wait [#allocation5], 128  }
 0x114   :  { %1363 = vsyncadd [#allocation5], 4294967168 }
 0x115   :  { %1364 = dma.done.wait [#allocation6], 16  }
 0x116   :  { %1365 = vsyncadd [#allocation6], 4294967280 }
 0x117   :  { %1366 = dma.done.wait [#allocation13], 16  }
 0x118   :  { %1367 = vsyncadd [#allocation13], 4294967280 }
 0x119   :  { %1084 = sfence }
 0x11a   :  { %1085 = vsyncpa [#allocation4], 1 }
 0x11b   :  { %1086 = vsyncpa [#allocation8], 1 }
 0x11c   :  { %1087 = vsyncpa [#allocation5], 1 }
 0x11d   :  { %1088 = vsyncpa [#allocation6], 1 }
 0x11e   :  { %1089 = vsyncpa [#allocation13], 1 }

</bundles_post_ra>
